<compile_context>
chip_gen: v7x
topology: tpu7x:2x2x1
jax: 0.10.0
libtpu: 0.0.40
codegen_flags: <defaults>
</compile_context>

<pallas_src>
import functools

import jax
import jax.numpy as jnp
import numpy as np
from jax.experimental import pallas as pl
from jax.experimental.pallas import tpu as pltpu

# ----- hyperparameters (EquiThreeBody defaults, scaled down for the demo) -----
N_ELEMENTS = 5
G_FEAT_DIM = 32      # g_feat_dim (default 128, small here per instructions)
LG_FEAT_DIM = 16     # lg_feat_dim
N_RBF = 20
CUTOFF = 5.0
TARGET_TILE = 1024   # edge lane-tile (multiple of 128); mem-bound sweet spot


def _choose_tile(e, target=TARGET_TILE):
    """Lane tile: multiple of 128, <= target, and >= 2 grid blocks when the
    padded extent allows (so v7x megacore can shard the grid axis)."""
    e128 = ((e + 127) // 128) * 128
    tile = min(target, max(128, ((e128 // 2) // 128) * 128))
    e_pad = ((e128 + tile - 1) // tile) * tile
    return tile, e_pad


def _bond_init_kernel(x_ref, off_ref, w_ref, b_ref, s_ref, v_ref, *, coeff, cutoff):
    """Fused GaussianRBF -> Linear -> CosineCutoff for one lane-tile of edges.

    Transposed layout (edges on the lane axis) so all stores are lane-dense:
      x_ref   : (4, TE)      row 0 = dist, rows 1..3 = vctr_norm
      off_ref : (n_rbf, 1)   RBF centers
      w_ref   : (F, n_rbf)   Linear weight (PyTorch layout)
      b_ref   : (F, 1)       Linear bias
      s_ref   : (F, TE)      edge_s^T   (= ((rbf @ W^T) + b) * fcut, transposed)
      v_ref   : (3, TE)      (vctr_norm * fcut)^T  (F-broadcast done by caller)
    """
    x = x_ref[...]                                   # (4, TE)
    d = x[0:1, :]                                    # (1, TE)
    v = x[1:4, :]                                    # (3, TE)
    rbf = jnp.exp(coeff * (d - off_ref[...]) ** 2)   # (n_rbf, TE)  GaussianRBF
    fcut = 0.5 * (jnp.cos(jnp.pi * d / cutoff) + 1.0)
    fcut = jnp.where(d < cutoff, fcut, 0.0)          # (1, TE)      CosineCutoff
    prbf = rbf * fcut                                # fold cutoff before matmul
    s = jnp.dot(w_ref[...], prbf, preferred_element_type=jnp.float32)  # (F, TE)
    s_ref[...] = s + b_ref[...] * fcut               # exactly (W@rbf + b)*fcut
    v_ref[...] = v * fcut                            # scaled direction vector


def bond_init(dist, vctr, offsets_np, w, bias, *, cutoff, target_tile=TARGET_TILE):
    """dist:(E,1) f32, vctr:(E,3) f32, w:(F,n_rbf), bias:(F,)
    -> edge_s:(E,F), v_scaled:(E,3)  (v_scaled = vctr * fcut; caller broadcasts)."""
    e = dist.shape[0]
    feat, n_rbf = w.shape
    tile, e_pad = _choose_tile(e, target_tile)

    # pack dist + vctr into one lane-dense (4, E_pad) array
    x = jnp.concatenate([dist, vctr], axis=1).astype(jnp.float32)       # (E, 4)
    x_t = jnp.pad(x.T, ((0, 0), (0, e_pad - e)))                        # (4, E_pad)

    width = float(offsets_np[1] - offsets_np[0])
    coeff = -0.5 / (width * width)
    off_col = jnp.asarray(offsets_np, jnp.float32).reshape(n_rbf, 1)
    b_col = bias.reshape(feat, 1).astype(jnp.float32)

    kernel = functools.partial(_bond_init_kernel, coeff=coeff, cutoff=float(cutoff))
    s_t, v_t = pl.pallas_call(
        kernel,
        out_shape=(jax.ShapeDtypeStruct((feat, e_pad), jnp.float32),
                   jax.ShapeDtypeStruct((3, e_pad), jnp.float32)),
        grid_spec=pltpu.PrefetchScalarGridSpec(
            num_scalar_prefetch=0,
            grid=(e_pad // tile,),
            in_specs=[
                pl.BlockSpec((4, tile), lambda i: (0, i)),        # packed dist/vctr
                pl.BlockSpec((n_rbf, 1), lambda i: (0, 0)),       # RBF offsets
                pl.BlockSpec((feat, n_rbf), lambda i: (0, 0)),    # W
                pl.BlockSpec((feat, 1), lambda i: (0, 0)),        # bias
            ],
            out_specs=[
                pl.BlockSpec((feat, tile), lambda i: (0, i)),     # edge_s^T
                pl.BlockSpec((3, tile), lambda i: (0, i)),        # (vctr*fcut)^T
            ],
        ),
        compiler_params=pltpu.CompilerParams(dimension_semantics=("parallel",)),
    )(x_t, off_col, w.astype(jnp.float32), b_col)

    edge_s = s_t[:, :e].T          # (E, F)   transpose back = layout plumbing
    v_scaled = v_t[:, :e].T        # (E, 3)
    return edge_s, v_scaled


def bond_init_ref(dist, vctr, offsets_np, w, bias, cutoff):
    """Pure-JAX reference (mirrors the PyTorch math) for correctness checking."""
    offsets = jnp.asarray(offsets_np, jnp.float32)
    width = float(offsets_np[1] - offsets_np[0])
    coeff = -0.5 / (width * width)
    rbf = jnp.exp(coeff * (dist - offsets[None, :]) ** 2)               # (E, n_rbf)
    fcut = 0.5 * (jnp.cos(jnp.pi * dist / cutoff) + 1.0) * (dist < cutoff)
    s = (rbf @ w.T + bias[None, :]) * fcut
    v = jnp.broadcast_to(vctr[:, :, None] * fcut[:, :, None],
                         (dist.shape[0], 3, w.shape[0]))
    return s, v


def xavier_uniform(key, shape):
    bound = float(np.sqrt(6.0 / (shape[0] + shape[1])))
    return jax.random.uniform(key, shape, jnp.float32, -bound, bound)


if __name__ == "__main__":
    key = jax.random.PRNGKey(0)
    k_pos, k_type, k_nemb, k_eemb, k_temb = jax.random.split(key, 5)

    # ---------------- synthetic graph (stand-in for the DGLGraph) ----------------
    n_nodes = 6
    pos = jax.random.uniform(k_pos, (n_nodes, 3), jnp.float32, 0.0, 3.0)
    node_type = jax.random.randint(k_type, (n_nodes,), 0, N_ELEMENTS)

    # directed edges: every ordered pair (i, j), i != j
    src_np, dst_np = np.nonzero(~np.eye(n_nodes, dtype=bool))
    src = jnp.asarray(src_np, jnp.int32)
    dst = jnp.asarray(dst_np, jnp.int32)
    n_edges = int(src_np.shape[0])

    # line graph: edge a -> edge b when dst[a] == src[b], excluding the reverse edge
    lg_a_l, lg_b_l = [], []
    for a in range(n_edges):
        for b in range(n_edges):
            if dst_np[a] == src_np[b] and not (src_np[a] == dst_np[b]
                                               and dst_np[a] == src_np[b]):
                lg_a_l.append(a)
                lg_b_l.append(b)
    lg_a = jnp.asarray(lg_a_l, jnp.int32)
    lg_b = jnp.asarray(lg_b_l, jnp.int32)
    n_triplets = len(lg_a_l)

    # ---------------- deterministic parameters (reset_parameters) ----------------
    n_emb = xavier_uniform(k_nemb, (N_ELEMENTS, G_FEAT_DIM))     # nn.Embedding.weight
    e_w = xavier_uniform(k_eemb, (G_FEAT_DIM, N_RBF))            # e_embedding.weight
    e_b = jnp.zeros((G_FEAT_DIM,), jnp.float32)
    t_w = xavier_uniform(k_temb, (LG_FEAT_DIM, N_RBF))           # t_embedding.weight
    t_b = jnp.zeros((LG_FEAT_DIM,), jnp.float32)

    two_offsets = np.linspace(0.0, CUTOFF, N_RBF, dtype=np.float32)          # twobody RBF
    three_offsets = np.linspace(0.0, 2.0 * CUTOFF, N_RBF, dtype=np.float32)  # threebody RBF

    # ---------------- _compute_neighbor_features (glue: gathers) ----------------
    pos_i = pos[src]
    pos_j = pos[dst]
    vctr_ij = pos_j - pos_i
    dist_ij = jnp.linalg.norm(vctr_ij, axis=1, keepdims=True)                # (E, 1)
    vctr_norm_ij = vctr_ij / dist_ij * CUTOFF                                # (E, 3)

    # ---------------- _compute_triplet_features (glue: gathers) -----------------
    pos_k = pos[dst[lg_b]]
    pos_j2 = pos[src[lg_a]]
    vctr_jk = pos_k - pos_j2
    dist_jk = jnp.linalg.norm(vctr_jk, axis=1, keepdims=True)                # (T, 1)
    vctr_norm_jk = vctr_jk / dist_jk                                         # (T, 3)

    # ---------------- _init_atoms (glue: embedding gather) ----------------------
    node_s = n_emb[node_type][:, None, :]                                    # (N, 1, G)
    node_v = jnp.zeros((n_nodes, 3, G_FEAT_DIM), jnp.float32)                # (N, 3, G)

    # ---------------- _init_bonds (Pallas kernel) --------------------------------
    edge_s2d, edge_vsc = bond_init(dist_ij, vctr_norm_ij, two_offsets,
                                   e_w, e_b, cutoff=CUTOFF)
    edge_s = edge_s2d[:, None, :]                                            # (E, 1, G)
    edge_v = jnp.broadcast_to(edge_vsc[:, :, None],
                              (n_edges, 3, G_FEAT_DIM))                      # (E, 3, G)

    # ---------------- _init_triplets (Pallas kernel) -----------------------------
    tri_s2d, tri_vsc = bond_init(dist_jk, vctr_norm_jk, three_offsets,
                                 t_w, t_b, cutoff=2.0 * CUTOFF)
    triplet_s = tri_s2d[:, None, :]                                          # (T, 1, LG)
    triplet_v = jnp.broadcast_to(tri_vsc[:, :, None],
                                 (n_triplets, 3, LG_FEAT_DIM))               # (T, 3, LG)

    # TODO(synk): the n_interactions loop over TwoBodyEquiGraphConv /
    # ThreeBodyEquiGraphConvSimple is omitted (their source was not provided).

    outs = jax.block_until_ready(
        (node_s, node_v, edge_s, edge_v, triplet_s, triplet_v))

    # correctness check of the Pallas hot path against a pure-JAX reference
    s_ref, v_ref = bond_init_ref(dist_ij, vctr_norm_ij, two_offsets, e_w, e_b, CUTOFF)
    ts_ref, tv_ref = bond_init_ref(dist_jk, vctr_norm_jk, three_offsets, t_w, t_b,
                                   2.0 * CUTOFF)
    assert np.allclose(np.asarray(edge_s2d), np.asarray(s_ref), rtol=1e-5, atol=2e-5)
    assert np.allclose(np.asarray(edge_v), np.asarray(v_ref), rtol=1e-5, atol=2e-5)
    assert np.allclose(np.asarray(tri_s2d), np.asarray(ts_ref), rtol=1e-5, atol=2e-5)
    assert np.allclose(np.asarray(triplet_v), np.asarray(tv_ref), rtol=1e-5, atol=2e-5)

    print("KERNEL_OK")
</pallas_src>

<mosaic_0001>
module attributes {stable_mosaic.version = 11 : i64} {
  func.func @_bond_init_kernel(%arg0: i32, %arg1: memref<4x128xf32, #tpu.memory_space<vmem>>, %arg2: memref<20x1xf32, #tpu.memory_space<vmem>>, %arg3: memref<32x20xf32, #tpu.memory_space<vmem>>, %arg4: memref<32x1xf32, #tpu.memory_space<vmem>>, %arg5: memref<32x128xf32, #tpu.memory_space<vmem>>, %arg6: memref<3x128xf32, #tpu.memory_space<vmem>>) attributes {dimension_semantics = [#tpu.dimension_semantics<parallel>], iteration_bounds = array<i64: 1>, scalar_prefetch = 0 : i64, scratch_operands = 0 : i64, tpu.core_type = #tpu.core_type<tc>, window_params = [{transform_indices = @transform_0, window_bounds = array<i64: 4, 128>}, {pipeline_mode = #tpu.pipeline_mode<synchronous>, transform_indices = @transform_1, window_bounds = array<i64: 20, 1>}, {pipeline_mode = #tpu.pipeline_mode<synchronous>, transform_indices = @transform_2, window_bounds = array<i64: 32, 20>}, {pipeline_mode = #tpu.pipeline_mode<synchronous>, transform_indices = @transform_3, window_bounds = array<i64: 32, 1>}, {transform_indices = @transform_4, window_bounds = array<i64: 32, 128>}, {transform_indices = @transform_5, window_bounds = array<i64: 3, 128>}]} {
    %c0 = arith.constant 0 : index
    %c0_0 = arith.constant 0 : index
    %0 = vector.load %arg1[%c0, %c0_0] : memref<4x128xf32, #tpu.memory_space<vmem>>, vector<4x128xf32>
    %1 = vector.extract_strided_slice %0 {offsets = [0, 0], sizes = [1, 128], strides = [1, 1]} : vector<4x128xf32> to vector<1x128xf32>
    %2 = vector.extract_strided_slice %0 {offsets = [1, 0], sizes = [3, 128], strides = [1, 1]} : vector<4x128xf32> to vector<3x128xf32>
    %c0_1 = arith.constant 0 : index
    %c0_2 = arith.constant 0 : index
    %3 = vector.load %arg2[%c0_1, %c0_2] : memref<20x1xf32, #tpu.memory_space<vmem>>, vector<20x1xf32>
    %4 = vector.broadcast %1 : vector<1x128xf32> to vector<20x128xf32>
    %5 = vector.broadcast %3 : vector<20x1xf32> to vector<20x128xf32>
    %6 = arith.subf %4, %5 : vector<20x128xf32>
    %7 = arith.mulf %6, %6 : vector<20x128xf32>
    %cst = arith.constant -7.21999931 : f32
    %8 = vector.broadcast %cst : f32 to vector<20x128xf32>
    %9 = arith.mulf %8, %7 : vector<20x128xf32>
    %10 = math.exp %9 : vector<20x128xf32>
    %cst_3 = arith.constant 3.14159274 : f32
    %11 = vector.broadcast %cst_3 : f32 to vector<1x128xf32>
    %12 = arith.mulf %11, %1 : vector<1x128xf32>
    %cst_4 = arith.constant 5.000000e+00 : f32
    %13 = vector.broadcast %cst_4 : f32 to vector<1x128xf32>
    %14 = arith.divf %12, %13 : vector<1x128xf32>
    %15 = math.cos %14 : vector<1x128xf32>
    %cst_5 = arith.constant 1.000000e+00 : f32
    %16 = vector.broadcast %cst_5 : f32 to vector<1x128xf32>
    %17 = arith.addf %15, %16 : vector<1x128xf32>
    %cst_6 = arith.constant 5.000000e-01 : f32
    %18 = vector.broadcast %cst_6 : f32 to vector<1x128xf32>
    %19 = arith.mulf %18, %17 : vector<1x128xf32>
    %cst_7 = arith.constant 5.000000e+00 : f32
    %20 = vector.broadcast %cst_7 : f32 to vector<1x128xf32>
    %21 = arith.cmpf olt, %1, %20 : vector<1x128xf32>
    %cst_8 = arith.constant 0.000000e+00 : f32
    %22 = vector.broadcast %cst_8 : f32 to vector<1x128xf32>
    %23 = arith.select %21, %19, %22 : vector<1x128xi1>, vector<1x128xf32>
    %24 = vector.broadcast %23 : vector<1x128xf32> to vector<20x128xf32>
    %25 = arith.mulf %10, %24 : vector<20x128xf32>
    %c0_9 = arith.constant 0 : index
    %c0_10 = arith.constant 0 : index
    %26 = vector.load %arg3[%c0_9, %c0_10] : memref<32x20xf32, #tpu.memory_space<vmem>>, vector<32x20xf32>
    %cst_11 = arith.constant dense<0.000000e+00> : vector<32x128xf32>
    %27 = tpu.matmul %26, %25, %cst_11 {dimension_numbers = #tpu.dot_dimension_numbers<[1], [0], [0], [1], [0, 0, 1, 1], [], []>} : vector<32x20xf32>, vector<20x128xf32>, vector<32x128xf32> -> vector<32x128xf32>
    %c0_12 = arith.constant 0 : index
    %c0_13 = arith.constant 0 : index
    %28 = vector.load %arg4[%c0_12, %c0_13] : memref<32x1xf32, #tpu.memory_space<vmem>>, vector<32x1xf32>
    %29 = vector.broadcast %28 : vector<32x1xf32> to vector<32x128xf32>
    %30 = vector.broadcast %23 : vector<1x128xf32> to vector<32x128xf32>
    %31 = arith.mulf %29, %30 : vector<32x128xf32>
    %32 = arith.addf %27, %31 : vector<32x128xf32>
    %c0_14 = arith.constant 0 : index
    %c0_15 = arith.constant 0 : index
    %33 = vector.load %arg5[%c0_14, %c0_15] : memref<32x128xf32, #tpu.memory_space<vmem>>, vector<32x128xf32>
    tpu.vector_store %arg5[%c0_14, %c0_15], %32 {strides = array<i32>} : memref<32x128xf32, #tpu.memory_space<vmem>>, vector<32x128xf32>,
    %34 = vector.broadcast %23 : vector<1x128xf32> to vector<3x128xf32>
    %35 = arith.mulf %2, %34 : vector<3x128xf32>
    %c0_16 = arith.constant 0 : index
    %c0_17 = arith.constant 0 : index
    %36 = vector.load %arg6[%c0_16, %c0_17] : memref<3x128xf32, #tpu.memory_space<vmem>>, vector<3x128xf32>
    tpu.vector_store %arg6[%c0_16, %c0_17], %35 {strides = array<i32>} : memref<3x128xf32, #tpu.memory_space<vmem>>, vector<3x128xf32>,
    return
  }
  func.func @transform_0(%arg0: i32) -> (i32, i32) {
    %c0_i32 = arith.constant 0 : i32
    %c0_i32_0 = arith.constant 0 : i32
    return %c0_i32, %arg0 : i32, i32
  }
  func.func @transform_1(%arg0: i32) -> (i32, i32) {
    %c0_i32 = arith.constant 0 : i32
    %c0_i32_0 = arith.constant 0 : i32
    %c0_i32_1 = arith.constant 0 : i32
    return %c0_i32, %c0_i32_0 : i32, i32
  }
  func.func @transform_2(%arg0: i32) -> (i32, i32) {
    %c0_i32 = arith.constant 0 : i32
    %c0_i32_0 = arith.constant 0 : i32
    %c0_i32_1 = arith.constant 0 : i32
    return %c0_i32, %c0_i32_0 : i32, i32
  }
  func.func @transform_3(%arg0: i32) -> (i32, i32) {
    %c0_i32 = arith.constant 0 : i32
    %c0_i32_0 = arith.constant 0 : i32
    %c0_i32_1 = arith.constant 0 : i32
    return %c0_i32, %c0_i32_0 : i32, i32
  }
  func.func @transform_4(%arg0: i32) -> (i32, i32) {
    %c0_i32 = arith.constant 0 : i32
    %c0_i32_0 = arith.constant 0 : i32
    return %c0_i32, %arg0 : i32, i32
  }
  func.func @transform_5(%arg0: i32) -> (i32, i32) {
    %c0_i32 = arith.constant 0 : i32
    %c0_i32_0 = arith.constant 0 : i32
    return %c0_i32, %arg0 : i32, i32
  }
}

</mosaic_0001>

<bundles_post_ra>
// kernel: tpu_custom_call.1
= control target key start
LH: loop header
LB: loop body
LE: loop exit
PB: predicated region body
PF: predicated region fallthrough
CT: control target
= control target key end

     0   :  { %11 = vsyncpa [#allocation3], 0  ;;  %v457_v2 = vmov 0   ;;  %s589_s0 = inlined_call_operand.vmem [shape: f32[4,128], index: 0, kind: input, shape index: {}]   ;;  %s590_s1 = inlined_call_operand.vmem [shape: f32[20,1], index: 1, kind: input, shape index: {}]   ;;  %s591_s2 = inlined_call_operand.vmem [shape: f32[32,20], index: 2, kind: input, shape index: {}]   ;;  %s592_s3 = inlined_call_operand.vmem [shape: f32[32,1], index: 3, kind: input, shape index: {}]   ;;  %s593_s4 = inlined_call_operand.hbm [shape: f32[32,128], index: 4, kind: output, shape index: {0}]   ;;  %s594_s5 = inlined_call_operand.hbm [shape: f32[3,128], index: 5, kind: output, shape index: {1}]  }
   0x1   :  { %v22_v0 = vld [vmem:[%s590_s1] sm:$0xff]  ;;  %v24_v1 = vld [vmem:[%s590_s1 + $0x10] sm:$0xf]  ;;  %397 = vset.pattern.permute.xlu0 %v457_v2  ;;  %398 = vset.pattern.permute.xlu1 %v457_v2  ;;  %v23_v3 = vld [vmem:[%s590_s1 + $0x8] sm:$0xff] }
   0x2   :  { %31 = vperm.xlu0 %397, %v22_v0   ;;  %41 = vperm.xlu1 %398, %v24_v1   ;;  %v180_v4 = vld [vmem:[%s592_s3] sm:$0xff] }
   0x3   :  { %v513_v5 = vld [vmem:[%s589_s0] sm:$0xf] }
   0x4   :  { %12 = vsyncpa [#allocation5], 0  ;;  %v59_v6 = vmul.f32 3.1415927, %v513_v5  ;;  %v181_v7 = vld [vmem:[%s592_s3 + $0x8] sm:$0xff]  ;;  %v182_v8 = vld [vmem:[%s592_s3 + $0x10] sm:$0xff] }
   0x5   :  { %v183_v11 = vld [vmem:[%s592_s3 + $0x18] sm:$0xff]  ;;  %v458_v22 = vmov 683565275   ;;  %v459_v24 = vmov 2475754826   ;;  %v176_v61 = vld [vmem:[%s591_s2] sm:$0xff] }
   0x6   :  { %36 = vperm.xlu0 %397, %v23_v3   ;;  %186 = vperm.xlu1 %398, %v180_v4   ;;  %v522_v9 = vmul.f32 0.2, %v59_v6  ;;  %v460_v26 = vmov 2131351028   ;;  %v461_v28 = vmov 2102212464  }
   0x7   :  { %v462_v30 = vmov 920167782   ;;  %v463_v37 = vmov 1326507024   ;;  %vm208_vm5 = vcmask 162816   ;;  %v178_v62 = vld [vmem:[%s591_s2 + $0x10] sm:$0xff] }
   0x8   :  { %v65_v10 = vand.u32 2139095040, %v522_v9  ;;  %v62_v13 = vand.u32 2147483647, %v522_v9  ;;  %368 = vmatprep.mubr.msk.f32.mxu0 %vm208_vm5, %v176_v61  ;;  %371 = vmatprep.mubr.msk.f32.mxu1 %vm208_vm5, %v178_v62  ;;  %vm64_vm8 = vcmp.lt.s32.totalorder %v522_v9, 0  ;;  %vm154_vm13 = vweird.f32 %v522_v9  ;;  %s464_s14 = smov [#allocation4]  }
   0x9   :  { %vm167_vm14 = vcmp.lt.f32.partialorder %v513_v5, 5.0  ;;  %vm221_vm15 = vcmask 1043456   ;;  %s334_s15 = sshll.u32 %s464_s14, 4  ;;  %s335_s15 = int_to_ptr.vmem [resolvable:$true] %s334_s15 }
   0xa   :  { %191 = vperm.xlu0 %397, %v181_v7   ;;  %196 = vperm.xlu1 %398, %v182_v8   ;;  %v66_v12 = vshrl.u32 %v65_v10, 23  ;;  %v69_v16 = vand.u32 8388607, %v62_v13  ;;  %vm63_vm9 = vcmp.le.f32.partialorder %v62_v13, 0.7853982  ;;  %s409_s16 = scalar_lea.vmem %s335_s15, 64  ;;  %p414_p1 = scmp.lt.s32.totalorder %s335_s15, %s335_s15 }
   0xb   :  { %p410_p0 = scmp.ne.s32.totalorder %s335_s15, %s409_s16  ;;  %p415_p2 = scmp.lt.s32.totalorder %s409_s16, %s409_s16 }
   0xc   :  { %v346_v14 = vadd.s32 4294967169, %v66_v12  ;;  %v70_v19 = vor.u32 8388608, %v69_v16 }
   0xd   :  { %p416_p3 = por %p415_p2, %p414_p1 }
   0xe   :  { %201 = vperm.xlu0 %397, %v183_v11   ;;  %v72_v15 = vadd.s32 1, %v346_v14  ;;  %v110_v39 = vshll.u32 %v70_v19, 8 }
   0xf   :  { %p417_p4 = pnand %p416_p3, %p410_p0 }
  0x10   :  { %vm73_vm0 = vcmp.gt.s32.totalorder %v72_v15, 0 }
  0x11   :  { %v74_v17 = vsel %vm73_vm0, %v72_v15, 0 }
  0x12   :  { %v76_v18 = vand.u32 31, %v74_v17  ;;  %v75_v20 = vshrl.u32 %v74_v17, 5 }
  0x14   :  { %v77_v21 = vsub.s32 32, %v76_v18  ;;  %v79_v23 = vshll.u32 %v458_v22, %v76_v18  ;;  %v82_v25 = vshll.u32 %v459_v24, %v76_v18  ;;  %v85_v27 = vshll.u32 %v460_v26, %v76_v18 }
  0x15   :  { %v88_v29 = vshll.u32 %v461_v28, %v76_v18  ;;  %v91_v31 = vshll.u32 %v462_v30, %v76_v18  ;;  %vm94_vm1 = vcmp.lt.s32.totalorder %v75_v20, 1  ;;  %vm97_vm2 = vcmp.lt.s32.totalorder %v75_v20, 4 }
  0x16   :  { %v78_v32 = vshrl.u32 %v458_v22, %v77_v21  ;;  %v80_v33 = vshrl.u32 %v459_v24, %v77_v21  ;;  %v83_v34 = vshrl.u32 %v460_v26, %v77_v21  ;;  %v86_v35 = vshrl.u32 %v461_v28, %v77_v21 }
  0x17   :  { %v89_v36 = vshrl.u32 %v462_v30, %v77_v21  ;;  %v92_v38 = vshrl.u32 %v463_v37, %v77_v21  ;;  %vm95_vm3 = vcmp.lt.s32.totalorder %v75_v20, 2  ;;  %vm96_vm4 = vcmp.lt.s32.totalorder %v75_v20, 3 }
  0x18   :  { %v81_v40 = vor.u32 %v80_v33, %v79_v23  ;;  %v84_v41 = vor.u32 %v83_v34, %v82_v25  ;;  %v87_v42 = vor.u32 %v86_v35, %v85_v27  ;;  %v25_v30 = vlaneseq }
  0x19   :  { %v90_v43 = vor.u32 %v89_v36, %v88_v29  ;;  %v93_v44 = vor.u32 %v92_v38, %v91_v31 }
  0x1a   :  { %v98_v45 = vsel %vm94_vm1, %v78_v32, %v81_v40  ;;  %v99_v46 = vsel %vm97_vm2, %v87_v42, 2102212464  ;;  %v102_v47 = vsel %vm94_vm1, %v81_v40, %v84_v41  ;;  %v106_v48 = vsel %vm94_vm1, %v84_v41, %v87_v42 }
  0x1b   :  { %v100_v49 = vsel %vm96_vm4, %v84_v41, %v99_v46  ;;  %v103_v50 = vsel %vm97_vm2, %v90_v43, 920167782  ;;  %v107_v51 = vsel %vm97_vm2, %v93_v44, 1326507024  ;;  %v26_v32 = vshrl.u32 %v25_v30, 7 }
  0x1c   :  { %v104_v52 = vsel %vm96_vm4, %v87_v42, %v103_v50  ;;  %v108_v53 = vsel %vm96_vm4, %v90_v43, %v107_v51  ;;  %v101_v54 = vsel %vm95_vm3, %v98_v45, %v100_v49 }
  0x1d   :  { %v105_v55 = vsel %vm95_vm3, %v102_v47, %v104_v52  ;;  %v109_v56 = vsel %vm95_vm3, %v106_v48, %v108_v53  ;;  %v117_v63 = vmul.u32 %v110_v39, %v101_v54  ;;  %v27_v35 = vsub.s32 0, %v26_v32 }
  0x1e   :  { %v531_v57 = vmul.u32.u64.low %v110_v39, %v109_v56  ;;  %v532_v58 = vmul.u32.u64.high %v110_v39, %v109_v56, %v531_v57  ;;  %v534_v59 = vmul.u32.u64.low %v110_v39, %v105_v55  ;;  %v535_v60 = vmul.u32.u64.high %v110_v39, %v105_v55, %v534_v59 }
  0x1f   :  { %v28_v39 = vrot.slane %v513_v5, %v27_v35 }
  0x20   :  { %vm119_vm6 = vc.u32 %v532_v58, %v534_v59  ;;  %v120_v0 = vadd.s32 1, %v535_v60  ;;  %v118_v16 = vadd.s32 %v534_v59, %v532_v58 }
  0x22   :  { %v121_v1 = vsel %vm119_vm6, %v120_v0, %v535_v60 }
  0x23   :  { %v122_v2 = vadd.s32 %v121_v1, %v117_v63 }
  0x25   :  { %v123_v3 = vadd.s32 536870912, %v122_v2 }
  0x27   :  { %v124_v4 = vshrl.u32 %v123_v3, 30 }
  0x29   :  { %v125_v6 = vshll.u32 %v124_v4, 30  ;;  %v148_v31 = vsub.s32 4, %v124_v4 }
  0x2b   :  { %v126_v7 = vsub.s32 %v122_v2, %v125_v6  ;;  %v149_v33 = vsel %vm64_vm8, %v148_v31, %v124_v4 }
  0x2c   :  { %v151_v34 = vsel %vm63_vm9, 0, %v149_v33 }
  0x2d   :  { %v128_v8 = vsub.s32 0, %v126_v7  ;;  %v155_v38 = vand.u32 3, %v151_v34 }
  0x2f   :  { %v347_v10 = vmin.u32 %v128_v8, %v126_v7  ;;  %vm157_vm10 = vcmp.eq.s32.totalorder %v155_v38, 0  ;;  %vm160_vm11 = vcmp.eq.s32.totalorder %v155_v38, 2  ;;  %vm156_vm12 = vcmp.lt.s32.totalorder %v155_v38, 2  ;;  %v179_v8 = vld [vmem:[%s591_s2 + $0x18] sm:$0xff] }
  0x31   :  { %v130_v11 = vclz %v347_v10 }
  0x33   :  { %v348_v12 = vadd.s32 4294967294, %v130_v11 }
  0x35   :  { %vm349_vm7 = vcmp.lt.s32.totalorder %v348_v12, 0 }
  0x36   :  { %v133_v14 = vsel %vm349_vm7, 0, %v348_v12 }
  0x37   :  { %v138_v15 = vsub.s32 4294967266, %v133_v14  ;;  %v134_v17 = vsub.s32 32, %v133_v14  ;;  %v135_v19 = vshll.u32 %v126_v7, %v133_v14  ;;  %v177_v7 = vld [vmem:[%s591_s2 + $0x8] sm:$0xff] }
  0x39   :  { %v139_v18 = vadd.s32 127, %v138_v15  ;;  %v136_v20 = vshrl.u32 %v118_v16, %v134_v17 }
  0x3b   :  { %v140_v21 = vshll.u32 %v139_v18, 23  ;;  %v137_v22 = vor.u32 %v136_v20, %v135_v19 }
  0x3d   :  { %v141_v23 = vor.u32 4788187, %v140_v21  ;;  %v144_v25 = vcvt.s32.f32 %v137_v22 }
  0x3f   :  { %v142_v24 = vand.u32 2147483647, %v141_v23 }
  0x41   :  { %v145_v26 = vmul.f32 %v144_v25, %v142_v24 }
  0x43   :  { %v146_v27 = vxor.u32 2147483648, %v145_v26 }
  0x45   :  { %v147_v28 = vsel %vm64_vm8, %v146_v27, %v145_v26 }
  0x46   :  { %v150_v29 = vsel %vm63_vm9, %v522_v9, %v147_v28 }
  0x47   :  { %399 = vcosq.f32 %v150_v29 }
  0x48   :  { %401 = vsinq.f32 %v150_v29 }
  0x51   :  { %v400_v36 = vpop.eup %399 }
  0x52   :  { %v402_v37 = vpop.eup %401  ;;  %v161_v41 = vxor.u32 2147483648, %v400_v36 }
  0x53   :  { %v158_v40 = vxor.u32 2147483648, %v402_v37 }
  0x54   :  { %v162_v46 = vsel %vm160_vm11, %v161_v41, %v402_v37 }
  0x55   :  { %v159_v45 = vsel %vm157_vm10, %v400_v36, %v158_v40 }
  0x56   :  { %v163_v51 = vsel %vm156_vm12, %v159_v45, %v162_v46 }
  0x57   :  { %v164_v56 = vsel %vm154_vm13, nan, %v163_v51 }
  0x58   :  { %v165_v59 = vadd.f32 1.0, %v164_v56 }
  0x5a   :  { %v166_v61 = vmul.f32 0.5, %v165_v59 }
  0x5c   :  { %v168_v62 = vsel %vm167_vm14, %v166_v61, 0.0 }
  0x5d   :  { %v172_v0 = vrot.slane %v168_v62, %v27_v35 }
  0x5f   :  { %v314_v10 = vmul.f32 %v172_v0, %v513_v5 }
  0x61   :  { %315 = vst [vmem:[#allocation4 - $0x1] sm:$0xe] %v314_v10 }
  0x81   :  { %v32_v13 = vpop.permute.xlu0 %31  ;;  %v42_v42 = vpop.permute.xlu1 %41 }
  0x82   :  { %v44_v43 = vsub.f32 %v28_v39, %v32_v13  ;;  %v46_v44 = vsub.f32 %v28_v39, %v42_v42 }
  0x84   :  { %v47_v47 = vmul.f32 %v44_v43, %v44_v43  ;;  %v49_v48 = vmul.f32 %v46_v44, %v46_v44 }
  0x85   :  { %v37_v49 = vpop.permute.xlu0 %36 }
  0x86   :  { %v50_v50 = vmul.f32 -7.2199993, %v47_v47  ;;  %v52_v52 = vmul.f32 -7.2199993, %v49_v48  ;;  %v45_v53 = vsub.f32 %v28_v39, %v37_v49 }
  0x88   :  { %v53_v54 = vmul.f32 1.442695, %v50_v50  ;;  %v48_v55 = vmul.f32 %v45_v53, %v45_v53  ;;  %v57_v57 = vmul.f32 1.442695, %v52_v52 }
  0x8a   :  { %v51_v58 = vmul.f32 -7.2199993, %v48_v55  ;;  %403 = vpow2.f32 %v53_v54 }
  0x8b   :  { %405 = vpow2.f32 %v57_v57 }
  0x8c   :  { %v55_v60 = vmul.f32 1.442695, %v51_v58 }
  0x8e   :  { %407 = vpow2.f32 %v55_v60 }
  0x94   :  { %v404_v9 = vpop.eup %403 }
  0x95   :  { %v406_v63 = vpop.eup %405  ;;  %v173_v2 = vmul.f32 %v404_v9, %v172_v0 }
  0x96   :  { %v175_v6 = vmul.f32 %v406_v63, %v172_v0 }
  0x98   :  { %v408_v1 = vpop.eup %407 }
  0x99   :  { %v174_v3 = vmul.f32 %v408_v1, %v172_v0 }
  0x9b   :  { %v374_v4 = vpack.c.bf16 %v174_v3, %v173_v2 }
  0x9d   :  { %375 = vmatprep.subr.bf16.mxu0 %v374_v4  ;;  %378 = vmatprep.subr.bf16.mxu1 %v374_v4 }
  0x9e   :  { %377 = vmatpush3.bf16.msra.mxu0 %v374_v4  ;;  %380 = vmatpush3.bf16.msra.mxu1 %v374_v4 }
  0x9f   :  { %366 = vmatprep.subr.msk.mxu0 %vm221_vm15, %v175_v6  ;;  %379 = vmatprep.subr.msk.mxu1 %vm221_vm15, %v175_v6 }
  0xa2   :  { %367 = vmatpush3.msk.msra.mxu0 %vm221_vm15, %v175_v6  ;;  %381 = vmatpush3.msk.msra.mxu1 %vm221_vm15, %v175_v6 }
  0xa3   :  { %369 = vmatmul.mubr.msk.f32.vlgmr.msra.gmra.mrb[0].mxu0 %vm208_vm5, %v177_v7  ;;  %372 = vmatmul.mubr.msk.f32.vlgmr.msra.gmra.mrb[0].mxu1 %vm208_vm5, %v179_v8 }
  0xa4   :  { %420 = shalt.err (!%p417_p4)
}
  0xa5   :  { %s421_s18 = scalar_lea.hbm %s594_s5, 64 }
  0xa6   :  { %p422_p5 = scmp.ne.s32.totalorder %s594_s5, %s421_s18  ;;  %p425_p6 = scmp.lt.u32.totalorder %s421_s18, %s594_s5 }
  0xa8   :  { %p427_p7 = pnand %p425_p6, %p422_p5 }
  0xaa   :  { %430 = shalt.err (!%p427_p7)
}
  0xab   :  { %337 = dma.vmem_to_hbm [thread:$0]  %s335_s15, 64, %s594_s5, [#allocation5]   ;;  %v192_v5 = vpop.permute.xlu0 %191  ;;  %v187_v11 = vpop.permute.xlu1 %186 }
  0xac   :  { %s465_s25 = smov [#allocation2]   ;;  %v205_v15 = vmul.f32 %v192_v5, %v172_v0  ;;  %v204_v17 = vmul.f32 %v187_v11, %v172_v0 }
  0xad   :  { %s321_s26 = sshll.u32 %s465_s25, 4  ;;  %s322_s26 = int_to_ptr.vmem [resolvable:$true] %s321_s26 }
  0xae   :  { %s431_s5 = scalar_lea.vmem %s322_s26, 512  ;;  %p436_p9 = scmp.lt.s32.totalorder %s322_s26, %s322_s26 }
  0xaf   :  { %v202_v12 = vpop.permute.xlu0 %201  ;;  %v197_v14 = vpop.permute.xlu1 %196  ;;  %p432_p8 = scmp.ne.s32.totalorder %s322_s26, %s431_s5  ;;  %p437_p10 = scmp.lt.s32.totalorder %s431_s5, %s431_s5 }
  0xb0   :  { %v207_v16 = vmul.f32 %v202_v12, %v172_v0  ;;  %v206_v18 = vmul.f32 %v197_v14, %v172_v0 }
  0xb1   :  { %p438_p11 = por %p437_p10, %p436_p9 }
  0xb3   :  { %p439_p12 = pnand %p438_p11, %p432_p8 }
 0x176   :  { %v370_v19 = vpop.f32.mrb[0].mxu0  ;;  %v373_v20 = vpop.f32.mrb[0].mxu1 }
 0x177   :  { %v297_v21 = vadd.f32 %v370_v19, %v205_v15  ;;  %v307_v22 = vadd.f32 %v373_v20, %v207_v16  ;;  %v291_v23 = vpop.f32.mrb[1].mxu0  ;;  %v301_v24 = vpop.f32.mrb[1].mxu1 }
 0x178   :  { %v292_v25 = vadd.f32 %v291_v23, %v204_v17  ;;  %v302_v26 = vadd.f32 %v301_v24, %v206_v18 }
 0x179   :  { %311 = vst [vmem:[#allocation2 + $0x8] sm:$0xff] %v297_v21  ;;  %313 = vst [vmem:[#allocation2 + $0x18] sm:$0xff] %v307_v22 }
 0x17a   :  { %310 = vst [vmem:[#allocation2] sm:$0xff] %v292_v25  ;;  %312 = vst [vmem:[#allocation2 + $0x10] sm:$0xff] %v302_v26 }
 0x17b   :  { %442 = shalt.err (!%p439_p12)
}
 0x17c   :  { %s443_s29 = scalar_lea.hbm %s593_s4, 512 }
 0x17d   :  { %p444_p13 = scmp.ne.s32.totalorder %s593_s4, %s443_s29  ;;  %p447_p0 = scmp.lt.u32.totalorder %s443_s29, %s593_s4 }
 0x17f   :  { %p449_p1 = pnand %p447_p0, %p444_p13 }
 0x181   :  { %452 = shalt.err (!%p449_p1)
}
 0x182   :  { %s466_s3 = smov 128   ;;  %s467_s7 = smov 8  }
 0x183   :  { %327 = dma.vmem_to_hbm [thread:$0]  %s322_s26, 512, %s593_s4, [#allocation3], %s466_s3, %s466_s3, %s467_s7  }
 0x184   :  { %453 = dma.done.wait [#allocation3], 512  }
 0x185   :  { %454 = vsyncadd [#allocation3], 4294966784 }
 0x186   :  { %455 = dma.done.wait [#allocation5], 64  }
 0x187   :  { %456 = vsyncadd [#allocation5], 4294967232 }
 0x188   :  { %344 = vsyncpa [#allocation3], 1 }
 0x189   :  { %345 = vsyncpa [#allocation5], 1 }

</bundles_post_ra>
